<compile_context>
chip_gen: v6e
topology: v6e:2x2x1
jax: 0.10.0
libtpu: 0.0.40
codegen_flags: <defaults>
</compile_context>

<pallas_src>
import jax
import jax.numpy as jnp
import numpy as np
from jax import lax
from jax.experimental import pallas as pl
from jax.experimental.pallas import tpu as pltpu

K = 7
PAD = (K - 1) // 2
EPS = 1e-5

_SUBLANE = 8
_LANE = 128
_FUSED_VMEM_BUDGET = 36 * 1024 * 1024   # conservative working-set cap (v7x: 64 MiB VMEM / TC)


def _round_up(x, m):
    return (x + m - 1) // m * m


# ----------------------------- in-kernel helpers ---------------------------------------

def _shift_lanes(h, s, use_roll):
    """out[:, j] = h[:, j + s]; lanes shifted in from outside are zero or wrapped
    (caller masks them with the within-sample validity mask)."""
    if s == 0:
        return h
    c, nl = h.shape
    if use_roll:
        # XLU lane rotate (frees VALU/vld slots); wrapped lanes are masked by the caller.
        return pltpu.roll(h, (-s) % nl, axis=1)
    z = jnp.zeros((c, abs(s)), h.dtype)
    if s > 0:
        return jnp.concatenate([h[:, s:], z], axis=1)
    return jnp.concatenate([z, h[:, : nl + s]], axis=1)


def _im2col(h, masks, use_roll):
    """(C, N*L) -> (K*C, N*L); rows [k*C, (k+1)*C) hold h[c, j + k - PAD], with true zeros
    outside each sample (== Conv1d zero padding applied to the *current* activation)."""
    pieces = []
    for k in range(K):
        s = k - PAD
        x = _shift_lanes(h, s, use_roll)
        if s != 0:
            x = x * masks[k]                 # (1, N*L) f32 mask broadcast over channels
        pieces.append(x)
    return jnp.concatenate(pieces, axis=0)   # sublane-aligned (C padded to multiple of 8)


def _bn_relu(y, gb, inv_count):
    """Training-mode BatchNorm1d (batch stats over (N, L), biased var) + ReLU.
    y: (C, N*L) f32, gb: (C, 2) = [gamma, beta] (zero rows for padded channels)."""
    mean = jnp.sum(y, axis=1, keepdims=True) * inv_count          # (C, 1)
    d = y - mean
    var = jnp.sum(d * d, axis=1, keepdims=True) * inv_count       # (C, 1), biased
    scale = gb[:, 0:1] * lax.rsqrt(var + EPS)
    shift = gb[:, 1:2] - mean * scale
    return jnp.maximum(y * scale + shift, 0.0)


def _make_fused_kernel(l, nl, matmul_dtype):
    inv_nl = 1.0 / nl
    use_roll = (nl % _LANE == 0)

    def kernel(x_ref, pos_ref, w1_ref, w2_ref, gb1_ref, gb2_ref, o_ref):
        pos = pos_ref[...]                                        # (1, N*L) within-sample t
        masks = {}
        for k in range(K):
            s = k - PAD
            if s != 0:
                masks[k] = ((pos + s >= 0) & (pos + s < l)).astype(jnp.float32)

        def conv(h, w_ref):
            cols = _im2col(h, masks, use_roll)                    # (K*C, N*L)
            return jnp.dot(w_ref[...].astype(matmul_dtype), cols.astype(matmul_dtype),
                           preferred_element_type=jnp.float32)

        h1 = conv(x_ref[...], w1_ref)                             # (Cmid_p, N*L)
        a1 = _bn_relu(h1, gb1_ref[...], inv_nl)                   # stats never leave the kernel
        h2 = conv(a1, w2_ref)                                     # (Cout_p, N*L)
        o_ref[...] = _bn_relu(h2, gb2_ref[...], inv_nl)

    return kernel


# ----------------------------- wrapper ---------------------------------------------------

def _pack_weight(w, cin_p, cout_p):
    """PyTorch (Cout, Cin, K) -> (Cout_p, K*Cin_p), column index = k*Cin_p + ci, zero-padded."""
    c_out, c_in, k = w.shape
    w = jnp.transpose(w.astype(jnp.float32), (0, 2, 1))               # (Cout, K, Cin)
    w = jnp.pad(w, ((0, cout_p - c_out), (0, 0), (0, cin_p - c_in)))
    return w.reshape(cout_p, k * cin_p)


def _pack_gamma_beta(g, b, c_p):
    gb = jnp.stack([g.astype(jnp.float32), b.astype(jnp.float32)], axis=1)   # (C, 2)
    return jnp.pad(gb, ((0, c_p - gb.shape[0]), (0, 0)))   # padded rows -> scale = shift = 0


def _fused_vmem_bytes(nl, cin_p, cmid_p, cout_p):
    f32 = 4
    acts = (cin_p + K * cin_p            # x slab + conv1 im2col
            + 2 * cmid_p + K * cmid_p    # h1, BN1+ReLU, conv2 im2col
            + 2 * cout_p) * nl * f32     # h2 + output slab
    wts = (cmid_p * K * cin_p + cout_p * K * cmid_p + 2 * (cmid_p + cout_p)) * f32
    # inputs/outputs are double-buffered by the pipeline; add slack for Mosaic internals.
    return 2 * (cin_p + cout_p) * nl * f32 + acts + 2 * wts


def double_conv(x, w1, w2, g1, b1, g2, b2, *, matmul_dtype=jnp.float32):
    """DoubleConv forward (training-mode BN batch statistics).  NCL in / NCL out."""
    n, c_in, l = x.shape
    c_mid = w1.shape[0]
    c_out = w2.shape[0]
    nl = n * l
    cin_p, cmid_p, cout_p = (_round_up(c, _SUBLANE) for c in (c_in, c_mid, c_out))

    vmem_need = _fused_vmem_bytes(nl, cin_p, cmid_p, cout_p)
    if vmem_need > _FUSED_VMEM_BUDGET:
        # TODO(synk): batch-tiled 3-pass variant for working sets that do not fit VMEM.
        raise NotImplementedError(
            f"fused DoubleConv working set (~{vmem_need} B) exceeds the VMEM budget")

    # Channel-major slab with batch*length flattened onto lanes -> one wide matmul per conv.
    x2 = jnp.transpose(x.astype(jnp.float32), (1, 0, 2)).reshape(c_in, nl)
    x2 = jnp.pad(x2, ((0, cin_p - c_in), (0, 0)))
    # Compile-time within-sample position of every flattened lane (used for conv padding masks).
    pos = jnp.asarray((np.arange(nl) % l).reshape(1, nl), jnp.float32)

    wk1 = _pack_weight(w1, cin_p, cmid_p)        # (Cmid_p, K*Cin_p)
    wk2 = _pack_weight(w2, cmid_p, cout_p)       # (Cout_p, K*Cmid_p)
    gb1 = _pack_gamma_beta(g1, b1, cmid_p)       # (Cmid_p, 2)
    gb2 = _pack_gamma_beta(g2, b2, cout_p)       # (Cout_p, 2)

    vmem_limit = max(16 << 20, min(48 << 20, 2 * vmem_need + (4 << 20)))
    out2 = pl.pallas_call(
        _make_fused_kernel(l, nl, matmul_dtype),
        out_shape=jax.ShapeDtypeStruct((cout_p, nl), jnp.float32),
        grid=(1,),
        in_specs=[pl.BlockSpec((cin_p, nl), lambda i: (0, 0)),
                  pl.BlockSpec((1, nl), lambda i: (0, 0)),
                  pl.BlockSpec((cmid_p, K * cin_p), lambda i: (0, 0)),
                  pl.BlockSpec((cout_p, K * cmid_p), lambda i: (0, 0)),
                  pl.BlockSpec((cmid_p, 2), lambda i: (0, 0)),
                  pl.BlockSpec((cout_p, 2), lambda i: (0, 0))],
        out_specs=pl.BlockSpec((cout_p, nl), lambda i: (0, 0)),
        compiler_params=pltpu.CompilerParams(
            dimension_semantics=("arbitrary",),
            vmem_limit_bytes=vmem_limit),
    )(x2, pos, wk1, wk2, gb1, gb2)

    # Back to NCL; channel padding is dropped here.
    return jnp.transpose(out2[:c_out].reshape(c_out, n, l), (1, 0, 2))


# ----------------------------- pure-JAX reference ---------------------------------------

def ref_double_conv(x, w1, w2, g1, b1, g2, b2):
    """Pure-JAX reference mirroring the PyTorch module (training-mode BN)."""
    def conv(h, w):
        return lax.conv_general_dilated(
            h, w, window_strides=(1,), padding=[(PAD, PAD)],
            dimension_numbers=("NCH", "OIH", "NCH"))

    def bn_relu(h, g, b):
        mean = jnp.mean(h, axis=(0, 2), keepdims=True)
        var = jnp.mean((h - mean) ** 2, axis=(0, 2), keepdims=True)
        hn = (h - mean) * lax.rsqrt(var + EPS) * g.reshape(1, -1, 1) + b.reshape(1, -1, 1)
        return jnp.maximum(hn, 0.0)

    return bn_relu(conv(bn_relu(conv(x, w1), g1, b1), w2), g2, b2)


if __name__ == "__main__":
    N, Cin, Cout, L = 2, 4, 8, 16
    Cmid = Cout  # mid_channels defaults to out_channels

    key = jax.random.PRNGKey(0)
    k1, k2, k3, k4, k5, k6, k7 = jax.random.split(key, 7)
    x = jax.random.normal(k1, (N, Cin, L), jnp.float32)
    w1 = 0.2 * jax.random.normal(k2, (Cmid, Cin, K), jnp.float32)
    w2 = 0.2 * jax.random.normal(k3, (Cout, Cmid, K), jnp.float32)
    g1 = 1.0 + 0.1 * jax.random.normal(k4, (Cmid,), jnp.float32)
    b1 = 0.1 * jax.random.normal(k5, (Cmid,), jnp.float32)
    g2 = 1.0 + 0.1 * jax.random.normal(k6, (Cout,), jnp.float32)
    b2 = 0.1 * jax.random.normal(k7, (Cout,), jnp.float32)

    out = jax.block_until_ready(jax.jit(double_conv)(x, w1, w2, g1, b1, g2, b2))
    assert out.shape == (N, Cout, L)

    ref = ref_double_conv(x, w1, w2, g1, b1, g2, b2)
    np.testing.assert_allclose(np.asarray(out), np.asarray(ref), atol=1e-4, rtol=1e-4)
    print("KERNEL_OK")
</pallas_src>

<mosaic_0001>
module attributes {stable_mosaic.version = 11 : i64} {
  func.func @kernel(%arg0: i32, %arg1: memref<8x32xf32, #tpu.memory_space<vmem>>, %arg2: memref<1x32xf32, #tpu.memory_space<vmem>>, %arg3: memref<8x56xf32, #tpu.memory_space<vmem>>, %arg4: memref<8x56xf32, #tpu.memory_space<vmem>>, %arg5: memref<8x2xf32, #tpu.memory_space<vmem>>, %arg6: memref<8x2xf32, #tpu.memory_space<vmem>>, %arg7: memref<8x32xf32, #tpu.memory_space<vmem>>) attributes {dimension_semantics = [#tpu.dimension_semantics<arbitrary>], iteration_bounds = array<i64: 1>, scalar_prefetch = 0 : i64, scratch_operands = 0 : i64, tpu.core_type = #tpu.core_type<tc>, window_params = [{pipeline_mode = #tpu.pipeline_mode<synchronous>, transform_indices = @transform_0, window_bounds = array<i64: 8, 32>}, {pipeline_mode = #tpu.pipeline_mode<synchronous>, transform_indices = @transform_1, window_bounds = array<i64: 1, 32>}, {pipeline_mode = #tpu.pipeline_mode<synchronous>, transform_indices = @transform_2, window_bounds = array<i64: 8, 56>}, {pipeline_mode = #tpu.pipeline_mode<synchronous>, transform_indices = @transform_3, window_bounds = array<i64: 8, 56>}, {pipeline_mode = #tpu.pipeline_mode<synchronous>, transform_indices = @transform_4, window_bounds = array<i64: 8, 2>}, {pipeline_mode = #tpu.pipeline_mode<synchronous>, transform_indices = @transform_5, window_bounds = array<i64: 8, 2>}, {pipeline_mode = #tpu.pipeline_mode<synchronous>, transform_indices = @transform_6, window_bounds = array<i64: 8, 32>}]} {
    %c0 = arith.constant 0 : index
    %c0_0 = arith.constant 0 : index
    %0 = vector.load %arg2[%c0, %c0_0] : memref<1x32xf32, #tpu.memory_space<vmem>>, vector<1x32xf32>
    %cst = arith.constant -3.000000e+00 : f32
    %1 = vector.broadcast %cst : f32 to vector<1x32xf32>
    %2 = arith.addf %0, %1 : vector<1x32xf32>
    %cst_1 = arith.constant 0.000000e+00 : f32
    %3 = vector.broadcast %cst_1 : f32 to vector<1x32xf32>
    %4 = arith.cmpf oge, %2, %3 : vector<1x32xf32>
    %cst_2 = arith.constant -3.000000e+00 : f32
    %5 = vector.broadcast %cst_2 : f32 to vector<1x32xf32>
    %6 = arith.addf %0, %5 : vector<1x32xf32>
    %cst_3 = arith.constant 1.600000e+01 : f32
    %7 = vector.broadcast %cst_3 : f32 to vector<1x32xf32>
    %8 = arith.cmpf olt, %6, %7 : vector<1x32xf32>
    %9 = arith.andi %4, %8 : vector<1x32xi1>
    %10 = arith.extui %9 : vector<1x32xi1> to vector<1x32xi32>
    %11 = arith.sitofp %10 : vector<1x32xi32> to vector<1x32xf32>
    %cst_4 = arith.constant -2.000000e+00 : f32
    %12 = vector.broadcast %cst_4 : f32 to vector<1x32xf32>
    %13 = arith.addf %0, %12 : vector<1x32xf32>
    %cst_5 = arith.constant 0.000000e+00 : f32
    %14 = vector.broadcast %cst_5 : f32 to vector<1x32xf32>
    %15 = arith.cmpf oge, %13, %14 : vector<1x32xf32>
    %cst_6 = arith.constant -2.000000e+00 : f32
    %16 = vector.broadcast %cst_6 : f32 to vector<1x32xf32>
    %17 = arith.addf %0, %16 : vector<1x32xf32>
    %cst_7 = arith.constant 1.600000e+01 : f32
    %18 = vector.broadcast %cst_7 : f32 to vector<1x32xf32>
    %19 = arith.cmpf olt, %17, %18 : vector<1x32xf32>
    %20 = arith.andi %15, %19 : vector<1x32xi1>
    %21 = arith.extui %20 : vector<1x32xi1> to vector<1x32xi32>
    %22 = arith.sitofp %21 : vector<1x32xi32> to vector<1x32xf32>
    %cst_8 = arith.constant -1.000000e+00 : f32
    %23 = vector.broadcast %cst_8 : f32 to vector<1x32xf32>
    %24 = arith.addf %0, %23 : vector<1x32xf32>
    %cst_9 = arith.constant 0.000000e+00 : f32
    %25 = vector.broadcast %cst_9 : f32 to vector<1x32xf32>
    %26 = arith.cmpf oge, %24, %25 : vector<1x32xf32>
    %cst_10 = arith.constant -1.000000e+00 : f32
    %27 = vector.broadcast %cst_10 : f32 to vector<1x32xf32>
    %28 = arith.addf %0, %27 : vector<1x32xf32>
    %cst_11 = arith.constant 1.600000e+01 : f32
    %29 = vector.broadcast %cst_11 : f32 to vector<1x32xf32>
    %30 = arith.cmpf olt, %28, %29 : vector<1x32xf32>
    %31 = arith.andi %26, %30 : vector<1x32xi1>
    %32 = arith.extui %31 : vector<1x32xi1> to vector<1x32xi32>
    %33 = arith.sitofp %32 : vector<1x32xi32> to vector<1x32xf32>
    %cst_12 = arith.constant 1.000000e+00 : f32
    %34 = vector.broadcast %cst_12 : f32 to vector<1x32xf32>
    %35 = arith.addf %0, %34 : vector<1x32xf32>
    %cst_13 = arith.constant 0.000000e+00 : f32
    %36 = vector.broadcast %cst_13 : f32 to vector<1x32xf32>
    %37 = arith.cmpf oge, %35, %36 : vector<1x32xf32>
    %cst_14 = arith.constant 1.000000e+00 : f32
    %38 = vector.broadcast %cst_14 : f32 to vector<1x32xf32>
    %39 = arith.addf %0, %38 : vector<1x32xf32>
    %cst_15 = arith.constant 1.600000e+01 : f32
    %40 = vector.broadcast %cst_15 : f32 to vector<1x32xf32>
    %41 = arith.cmpf olt, %39, %40 : vector<1x32xf32>
    %42 = arith.andi %37, %41 : vector<1x32xi1>
    %43 = arith.extui %42 : vector<1x32xi1> to vector<1x32xi32>
    %44 = arith.sitofp %43 : vector<1x32xi32> to vector<1x32xf32>
    %cst_16 = arith.constant 2.000000e+00 : f32
    %45 = vector.broadcast %cst_16 : f32 to vector<1x32xf32>
    %46 = arith.addf %0, %45 : vector<1x32xf32>
    %cst_17 = arith.constant 0.000000e+00 : f32
    %47 = vector.broadcast %cst_17 : f32 to vector<1x32xf32>
    %48 = arith.cmpf oge, %46, %47 : vector<1x32xf32>
    %cst_18 = arith.constant 2.000000e+00 : f32
    %49 = vector.broadcast %cst_18 : f32 to vector<1x32xf32>
    %50 = arith.addf %0, %49 : vector<1x32xf32>
    %cst_19 = arith.constant 1.600000e+01 : f32
    %51 = vector.broadcast %cst_19 : f32 to vector<1x32xf32>
    %52 = arith.cmpf olt, %50, %51 : vector<1x32xf32>
    %53 = arith.andi %48, %52 : vector<1x32xi1>
    %54 = arith.extui %53 : vector<1x32xi1> to vector<1x32xi32>
    %55 = arith.sitofp %54 : vector<1x32xi32> to vector<1x32xf32>
    %cst_20 = arith.constant 3.000000e+00 : f32
    %56 = vector.broadcast %cst_20 : f32 to vector<1x32xf32>
    %57 = arith.addf %0, %56 : vector<1x32xf32>
    %cst_21 = arith.constant 0.000000e+00 : f32
    %58 = vector.broadcast %cst_21 : f32 to vector<1x32xf32>
    %59 = arith.cmpf oge, %57, %58 : vector<1x32xf32>
    %cst_22 = arith.constant 3.000000e+00 : f32
    %60 = vector.broadcast %cst_22 : f32 to vector<1x32xf32>
    %61 = arith.addf %0, %60 : vector<1x32xf32>
    %cst_23 = arith.constant 1.600000e+01 : f32
    %62 = vector.broadcast %cst_23 : f32 to vector<1x32xf32>
    %63 = arith.cmpf olt, %61, %62 : vector<1x32xf32>
    %64 = arith.andi %59, %63 : vector<1x32xi1>
    %65 = arith.extui %64 : vector<1x32xi1> to vector<1x32xi32>
    %66 = arith.sitofp %65 : vector<1x32xi32> to vector<1x32xf32>
    %c0_24 = arith.constant 0 : index
    %c0_25 = arith.constant 0 : index
    %67 = vector.load %arg1[%c0_24, %c0_25] : memref<8x32xf32, #tpu.memory_space<vmem>>, vector<8x32xf32>
    %cst_26 = arith.constant 0.000000e+00 : f32
    %68 = vector.broadcast %cst_26 : f32 to vector<8x3xf32>
    %69 = vector.extract_strided_slice %67 {offsets = [0, 0], sizes = [8, 29], strides = [1, 1]} : vector<8x32xf32> to vector<8x29xf32>
    %70 = tpu.concatenate %68, %69 in 1 : vector<8x3xf32>, vector<8x29xf32> -> vector<8x32xf32>
    %71 = vector.broadcast %11 : vector<1x32xf32> to vector<8x32xf32>
    %72 = arith.mulf %70, %71 : vector<8x32xf32>
    %cst_27 = arith.constant 0.000000e+00 : f32
    %73 = vector.broadcast %cst_27 : f32 to vector<8x2xf32>
    %74 = vector.extract_strided_slice %67 {offsets = [0, 0], sizes = [8, 30], strides = [1, 1]} : vector<8x32xf32> to vector<8x30xf32>
    %75 = tpu.concatenate %73, %74 in 1 : vector<8x2xf32>, vector<8x30xf32> -> vector<8x32xf32>
    %76 = vector.broadcast %22 : vector<1x32xf32> to vector<8x32xf32>
    %77 = arith.mulf %75, %76 : vector<8x32xf32>
    %cst_28 = arith.constant 0.000000e+00 : f32
    %78 = vector.broadcast %cst_28 : f32 to vector<8x1xf32>
    %79 = vector.extract_strided_slice %67 {offsets = [0, 0], sizes = [8, 31], strides = [1, 1]} : vector<8x32xf32> to vector<8x31xf32>
    %80 = tpu.concatenate %78, %79 in 1 : vector<8x1xf32>, vector<8x31xf32> -> vector<8x32xf32>
    %81 = vector.broadcast %33 : vector<1x32xf32> to vector<8x32xf32>
    %82 = arith.mulf %80, %81 : vector<8x32xf32>
    %cst_29 = arith.constant 0.000000e+00 : f32
    %83 = vector.broadcast %cst_29 : f32 to vector<8x1xf32>
    %84 = vector.extract_strided_slice %67 {offsets = [0, 1], sizes = [8, 31], strides = [1, 1]} : vector<8x32xf32> to vector<8x31xf32>
    %85 = tpu.concatenate %84, %83 in 1 : vector<8x31xf32>, vector<8x1xf32> -> vector<8x32xf32>
    %86 = vector.broadcast %44 : vector<1x32xf32> to vector<8x32xf32>
    %87 = arith.mulf %85, %86 : vector<8x32xf32>
    %cst_30 = arith.constant 0.000000e+00 : f32
    %88 = vector.broadcast %cst_30 : f32 to vector<8x2xf32>
    %89 = vector.extract_strided_slice %67 {offsets = [0, 2], sizes = [8, 30], strides = [1, 1]} : vector<8x32xf32> to vector<8x30xf32>
    %90 = tpu.concatenate %89, %88 in 1 : vector<8x30xf32>, vector<8x2xf32> -> vector<8x32xf32>
    %91 = vector.broadcast %55 : vector<1x32xf32> to vector<8x32xf32>
    %92 = arith.mulf %90, %91 : vector<8x32xf32>
    %cst_31 = arith.constant 0.000000e+00 : f32
    %93 = vector.broadcast %cst_31 : f32 to vector<8x3xf32>
    %94 = vector.extract_strided_slice %67 {offsets = [0, 3], sizes = [8, 29], strides = [1, 1]} : vector<8x32xf32> to vector<8x29xf32>
    %95 = tpu.concatenate %94, %93 in 1 : vector<8x29xf32>, vector<8x3xf32> -> vector<8x32xf32>
    %96 = vector.broadcast %66 : vector<1x32xf32> to vector<8x32xf32>
    %97 = arith.mulf %95, %96 : vector<8x32xf32>
    %98 = tpu.concatenate %72, %77, %82, %67, %87, %92, %97 in 0 : vector<8x32xf32>, vector<8x32xf32>, vector<8x32xf32>, vector<8x32xf32>, vector<8x32xf32>, vector<8x32xf32>, vector<8x32xf32> -> vector<56x32xf32>
    %c0_32 = arith.constant 0 : index
    %c0_33 = arith.constant 0 : index
    %99 = vector.load %arg3[%c0_32, %c0_33] : memref<8x56xf32, #tpu.memory_space<vmem>>, vector<8x56xf32>
    %cst_34 = arith.constant dense<0.000000e+00> : vector<8x32xf32>
    %100 = tpu.matmul %99, %98, %cst_34 {dimension_numbers = #tpu.dot_dimension_numbers<[1], [0], [0], [1], [0, 0, 1, 1], [], []>} : vector<8x56xf32>, vector<56x32xf32>, vector<8x32xf32> -> vector<8x32xf32>
    %c0_35 = arith.constant 0 : index
    %c0_36 = arith.constant 0 : index
    %101 = vector.load %arg5[%c0_35, %c0_36] : memref<8x2xf32, #tpu.memory_space<vmem>>, vector<8x2xf32>
    %cst_37 = arith.constant dense<0.000000e+00> : vector<8xf32>
    %102 = vector.multi_reduction <add>, %100, %cst_37 [1] : vector<8x32xf32> to vector<8xf32>
    %103 = vector.shape_cast %102 : vector<8xf32> to vector<8x1xf32>
    %cst_38 = arith.constant 3.125000e-02 : f32
    %104 = vector.broadcast %cst_38 : f32 to vector<8x1xf32>
    %105 = arith.mulf %103, %104 : vector<8x1xf32>
    %106 = vector.broadcast %105 : vector<8x1xf32> to vector<8x32xf32>
    %107 = arith.subf %100, %106 : vector<8x32xf32>
    %108 = arith.mulf %107, %107 : vector<8x32xf32>
    %cst_39 = arith.constant dense<0.000000e+00> : vector<8xf32>
    %109 = vector.multi_reduction <add>, %108, %cst_39 [1] : vector<8x32xf32> to vector<8xf32>
    %110 = vector.shape_cast %109 : vector<8xf32> to vector<8x1xf32>
    %cst_40 = arith.constant 3.125000e-02 : f32
    %111 = vector.broadcast %cst_40 : f32 to vector<8x1xf32>
    %112 = arith.mulf %110, %111 : vector<8x1xf32>
    %113 = vector.extract_strided_slice %101 {offsets = [0, 0], sizes = [8, 1], strides = [1, 1]} : vector<8x2xf32> to vector<8x1xf32>
    %cst_41 = arith.constant 9.99999974E-6 : f32
    %114 = vector.broadcast %cst_41 : f32 to vector<8x1xf32>
    %115 = arith.addf %112, %114 : vector<8x1xf32>
    %116 = math.rsqrt %115 : vector<8x1xf32>
    %117 = arith.mulf %113, %116 : vector<8x1xf32>
    %118 = vector.extract_strided_slice %101 {offsets = [0, 1], sizes = [8, 1], strides = [1, 1]} : vector<8x2xf32> to vector<8x1xf32>
    %119 = arith.mulf %105, %117 : vector<8x1xf32>
    %120 = arith.subf %118, %119 : vector<8x1xf32>
    %121 = vector.broadcast %117 : vector<8x1xf32> to vector<8x32xf32>
    %122 = arith.mulf %100, %121 : vector<8x32xf32>
    %123 = vector.broadcast %120 : vector<8x1xf32> to vector<8x32xf32>
    %124 = arith.addf %122, %123 : vector<8x32xf32>
    %cst_42 = arith.constant 0.000000e+00 : f32
    %125 = vector.broadcast %cst_42 : f32 to vector<8x32xf32>
    %126 = arith.maximumf %124, %125 : vector<8x32xf32>
    %cst_43 = arith.constant 0.000000e+00 : f32
    %127 = vector.broadcast %cst_43 : f32 to vector<8x3xf32>
    %128 = vector.extract_strided_slice %126 {offsets = [0, 0], sizes = [8, 29], strides = [1, 1]} : vector<8x32xf32> to vector<8x29xf32>
    %129 = tpu.concatenate %127, %128 in 1 : vector<8x3xf32>, vector<8x29xf32> -> vector<8x32xf32>
    %130 = vector.broadcast %11 : vector<1x32xf32> to vector<8x32xf32>
    %131 = arith.mulf %129, %130 : vector<8x32xf32>
    %cst_44 = arith.constant 0.000000e+00 : f32
    %132 = vector.broadcast %cst_44 : f32 to vector<8x2xf32>
    %133 = vector.extract_strided_slice %126 {offsets = [0, 0], sizes = [8, 30], strides = [1, 1]} : vector<8x32xf32> to vector<8x30xf32>
    %134 = tpu.concatenate %132, %133 in 1 : vector<8x2xf32>, vector<8x30xf32> -> vector<8x32xf32>
    %135 = vector.broadcast %22 : vector<1x32xf32> to vector<8x32xf32>
    %136 = arith.mulf %134, %135 : vector<8x32xf32>
    %cst_45 = arith.constant 0.000000e+00 : f32
    %137 = vector.broadcast %cst_45 : f32 to vector<8x1xf32>
    %138 = vector.extract_strided_slice %126 {offsets = [0, 0], sizes = [8, 31], strides = [1, 1]} : vector<8x32xf32> to vector<8x31xf32>
    %139 = tpu.concatenate %137, %138 in 1 : vector<8x1xf32>, vector<8x31xf32> -> vector<8x32xf32>
    %140 = vector.broadcast %33 : vector<1x32xf32> to vector<8x32xf32>
    %141 = arith.mulf %139, %140 : vector<8x32xf32>
    %cst_46 = arith.constant 0.000000e+00 : f32
    %142 = vector.broadcast %cst_46 : f32 to vector<8x1xf32>
    %143 = vector.extract_strided_slice %126 {offsets = [0, 1], sizes = [8, 31], strides = [1, 1]} : vector<8x32xf32> to vector<8x31xf32>
    %144 = tpu.concatenate %143, %142 in 1 : vector<8x31xf32>, vector<8x1xf32> -> vector<8x32xf32>
    %145 = vector.broadcast %44 : vector<1x32xf32> to vector<8x32xf32>
    %146 = arith.mulf %144, %145 : vector<8x32xf32>
    %cst_47 = arith.constant 0.000000e+00 : f32
    %147 = vector.broadcast %cst_47 : f32 to vector<8x2xf32>
    %148 = vector.extract_strided_slice %126 {offsets = [0, 2], sizes = [8, 30], strides = [1, 1]} : vector<8x32xf32> to vector<8x30xf32>
    %149 = tpu.concatenate %148, %147 in 1 : vector<8x30xf32>, vector<8x2xf32> -> vector<8x32xf32>
    %150 = vector.broadcast %55 : vector<1x32xf32> to vector<8x32xf32>
    %151 = arith.mulf %149, %150 : vector<8x32xf32>
    %cst_48 = arith.constant 0.000000e+00 : f32
    %152 = vector.broadcast %cst_48 : f32 to vector<8x3xf32>
    %153 = vector.extract_strided_slice %126 {offsets = [0, 3], sizes = [8, 29], strides = [1, 1]} : vector<8x32xf32> to vector<8x29xf32>
    %154 = tpu.concatenate %153, %152 in 1 : vector<8x29xf32>, vector<8x3xf32> -> vector<8x32xf32>
    %155 = vector.broadcast %66 : vector<1x32xf32> to vector<8x32xf32>
    %156 = arith.mulf %154, %155 : vector<8x32xf32>
    %157 = tpu.concatenate %131, %136, %141, %126, %146, %151, %156 in 0 : vector<8x32xf32>, vector<8x32xf32>, vector<8x32xf32>, vector<8x32xf32>, vector<8x32xf32>, vector<8x32xf32>, vector<8x32xf32> -> vector<56x32xf32>
    %c0_49 = arith.constant 0 : index
    %c0_50 = arith.constant 0 : index
    %158 = vector.load %arg4[%c0_49, %c0_50] : memref<8x56xf32, #tpu.memory_space<vmem>>, vector<8x56xf32>
    %cst_51 = arith.constant dense<0.000000e+00> : vector<8x32xf32>
    %159 = tpu.matmul %158, %157, %cst_51 {dimension_numbers = #tpu.dot_dimension_numbers<[1], [0], [0], [1], [0, 0, 1, 1], [], []>} : vector<8x56xf32>, vector<56x32xf32>, vector<8x32xf32> -> vector<8x32xf32>
    %c0_52 = arith.constant 0 : index
    %c0_53 = arith.constant 0 : index
    %160 = vector.load %arg6[%c0_52, %c0_53] : memref<8x2xf32, #tpu.memory_space<vmem>>, vector<8x2xf32>
    %cst_54 = arith.constant dense<0.000000e+00> : vector<8xf32>
    %161 = vector.multi_reduction <add>, %159, %cst_54 [1] : vector<8x32xf32> to vector<8xf32>
    %162 = vector.shape_cast %161 : vector<8xf32> to vector<8x1xf32>
    %cst_55 = arith.constant 3.125000e-02 : f32
    %163 = vector.broadcast %cst_55 : f32 to vector<8x1xf32>
    %164 = arith.mulf %162, %163 : vector<8x1xf32>
    %165 = vector.broadcast %164 : vector<8x1xf32> to vector<8x32xf32>
    %166 = arith.subf %159, %165 : vector<8x32xf32>
    %167 = arith.mulf %166, %166 : vector<8x32xf32>
    %cst_56 = arith.constant dense<0.000000e+00> : vector<8xf32>
    %168 = vector.multi_reduction <add>, %167, %cst_56 [1] : vector<8x32xf32> to vector<8xf32>
    %169 = vector.shape_cast %168 : vector<8xf32> to vector<8x1xf32>
    %cst_57 = arith.constant 3.125000e-02 : f32
    %170 = vector.broadcast %cst_57 : f32 to vector<8x1xf32>
    %171 = arith.mulf %169, %170 : vector<8x1xf32>
    %172 = vector.extract_strided_slice %160 {offsets = [0, 0], sizes = [8, 1], strides = [1, 1]} : vector<8x2xf32> to vector<8x1xf32>
    %cst_58 = arith.constant 9.99999974E-6 : f32
    %173 = vector.broadcast %cst_58 : f32 to vector<8x1xf32>
    %174 = arith.addf %171, %173 : vector<8x1xf32>
    %175 = math.rsqrt %174 : vector<8x1xf32>
    %176 = arith.mulf %172, %175 : vector<8x1xf32>
    %177 = vector.extract_strided_slice %160 {offsets = [0, 1], sizes = [8, 1], strides = [1, 1]} : vector<8x2xf32> to vector<8x1xf32>
    %178 = arith.mulf %164, %176 : vector<8x1xf32>
    %179 = arith.subf %177, %178 : vector<8x1xf32>
    %180 = vector.broadcast %176 : vector<8x1xf32> to vector<8x32xf32>
    %181 = arith.mulf %159, %180 : vector<8x32xf32>
    %182 = vector.broadcast %179 : vector<8x1xf32> to vector<8x32xf32>
    %183 = arith.addf %181, %182 : vector<8x32xf32>
    %cst_59 = arith.constant 0.000000e+00 : f32
    %184 = vector.broadcast %cst_59 : f32 to vector<8x32xf32>
    %185 = arith.maximumf %183, %184 : vector<8x32xf32>
    %c0_60 = arith.constant 0 : index
    %c0_61 = arith.constant 0 : index
    %186 = vector.load %arg7[%c0_60, %c0_61] : memref<8x32xf32, #tpu.memory_space<vmem>>, vector<8x32xf32>
    tpu.vector_store %arg7[%c0_60, %c0_61], %185 {strides = array<i32>} : memref<8x32xf32, #tpu.memory_space<vmem>>, vector<8x32xf32>,
    return
  }
  func.func @transform_0(%arg0: i32) -> (i32, i32) {
    %c0_i32 = arith.constant 0 : i32
    %c0_i32_0 = arith.constant 0 : i32
    %c0_i32_1 = arith.constant 0 : i32
    return %c0_i32, %c0_i32_0 : i32, i32
  }
  func.func @transform_1(%arg0: i32) -> (i32, i32) {
    %c0_i32 = arith.constant 0 : i32
    %c0_i32_0 = arith.constant 0 : i32
    %c0_i32_1 = arith.constant 0 : i32
    return %c0_i32, %c0_i32_0 : i32, i32
  }
  func.func @transform_2(%arg0: i32) -> (i32, i32) {
    %c0_i32 = arith.constant 0 : i32
    %c0_i32_0 = arith.constant 0 : i32
    %c0_i32_1 = arith.constant 0 : i32
    return %c0_i32, %c0_i32_0 : i32, i32
  }
  func.func @transform_3(%arg0: i32) -> (i32, i32) {
    %c0_i32 = arith.constant 0 : i32
    %c0_i32_0 = arith.constant 0 : i32
    %c0_i32_1 = arith.constant 0 : i32
    return %c0_i32, %c0_i32_0 : i32, i32
  }
  func.func @transform_4(%arg0: i32) -> (i32, i32) {
    %c0_i32 = arith.constant 0 : i32
    %c0_i32_0 = arith.constant 0 : i32
    %c0_i32_1 = arith.constant 0 : i32
    return %c0_i32, %c0_i32_0 : i32, i32
  }
  func.func @transform_5(%arg0: i32) -> (i32, i32) {
    %c0_i32 = arith.constant 0 : i32
    %c0_i32_0 = arith.constant 0 : i32
    %c0_i32_1 = arith.constant 0 : i32
    return %c0_i32, %c0_i32_0 : i32, i32
  }
  func.func @transform_6(%arg0: i32) -> (i32, i32) {
    %c0_i32 = arith.constant 0 : i32
    %c0_i32_0 = arith.constant 0 : i32
    %c0_i32_1 = arith.constant 0 : i32
    return %c0_i32, %c0_i32_0 : i32, i32
  }
}

</mosaic_0001>

<bundles_post_ra>
// kernel: double_conv.1
= control target key start
LH: loop header
LB: loop body
LE: loop exit
PB: predicated region body
PF: predicated region fallthrough
CT: control target
= control target key end

     0   :  { %v460_v1 = vmov 0.0   ;;  %s461_s23 = smov 125   ;;  %s462_s24 = smov 127   ;;  %vm465_vm0 = vmmov 0   ;;  %v68_v4 = vlaneseq  ;;  %vm125_vm12 = vcmask 236544   ;;  %s614_s0 = inlined_call_operand.vmem [shape: f32[8,32], index: 0, kind: input, shape index: {}]   ;;  %s615_s1 = inlined_call_operand.vmem [shape: f32[1,32], index: 1, kind: input, shape index: {}]   ;;  %s616_s2 = inlined_call_operand.vmem [shape: f32[8,56], index: 2, kind: input, shape index: {}]   ;;  %s617_s4 = inlined_call_operand.vmem [shape: f32[8,2], index: 4, kind: input, shape index: {}]   ;;  %s618_s3 = inlined_call_operand.vmem [shape: f32[8,56], index: 3, kind: input, shape index: {}]   ;;  %s619_s5 = inlined_call_operand.vmem [shape: f32[8,2], index: 5, kind: input, shape index: {}]   ;;  %s620_s6 = inlined_call_operand.vmem [shape: f32[8,32], index: 6, kind: output, shape index: {}]  }
   0x1   :  { %v508_v0 = vld [vmem:[%s614_s0] sm:$0xff]  ;;  %410 = vmatprep.subr.mxu0 %v460_v1  ;;  %427 = vmatprep.subr.mxu1 %v460_v1  ;;  %s463_s25 = smov 126   ;;  %s464_s26 = smov 1   ;;  %vm101_vm15 = vcmask 252928   ;;  %v468_v51 = vmov 0   ;;  %v469_v55 = vmov 1  }
   0x2   :  { %122 = vrot.lane.b32.xlu0 %v508_v0, %s461_s23  ;;  %98 = vrot.lane.b32.xlu1 %v508_v0, %s462_s24  ;;  %s466_s0 = smov 2   ;;  %s467_s27 = smov 3   ;;  %v23_v2 = vld [vmem:[%s615_s1] sm:$0x1]  ;;  %v69_v7 = vshrl.u32 %v68_v4, 7 }
   0x3   :  { %424 = vmatprep.mubr.msk.f32.mxu0 %vm465_vm0, %v460_v1  ;;  %441 = vmatprep.mubr.msk.f32.mxu1 %vm465_vm0, %v460_v1  ;;  %v54_v3 = vadd.f32 3.0, %v23_v2  ;;  %v48_v5 = vadd.f32 2.0, %v23_v2  ;;  %v42_v6 = vadd.f32 1.0, %v23_v2  ;;  %v36_v8 = vadd.f32 -1.0, %v23_v2  ;;  %v134_v42 = vld [vmem:[%s616_s2] sm:$0xff] }
   0x4   :  { %v70_v9 = vsub.s32 0, %v69_v7  ;;  %v30_v11 = vadd.f32 -2.0, %v23_v2  ;;  %v24_v12 = vadd.f32 -3.0, %v23_v2  ;;  %454 = vset.pattern.permute.xlu1 %v468_v51  ;;  %455 = vset.pattern.permute.xlu0 %v469_v55  ;;  %v209_v56 = vld [vmem:[%s617_s4] sm:$0xff] }
   0x5   :  { %vm55_vm1 = vcmp.ge.f32.partialorder %v54_v3, 0.0  ;;  %vm56_vm2 = vcmp.lt.f32.partialorder %v54_v3, 16.0  ;;  %vm49_vm4 = vcmp.ge.f32.partialorder %v48_v5, 0.0  ;;  %vm50_vm5 = vcmp.lt.f32.partialorder %v48_v5, 16.0 }
   0x6   :  { %110 = vrot.lane.b32.xlu0 %v508_v0, %s463_s25  ;;  %86 = vrot.lane.b32.xlu1 %v508_v0, %s464_s26  ;;  %vm57_vm3 = vmand %vm55_vm1, %vm56_vm2  ;;  %vm43_vm6 = vcmp.ge.f32.partialorder %v42_v6, 0.0  ;;  %vm44_vm7 = vcmp.lt.f32.partialorder %v42_v6, 16.0  ;;  %vm37_vm10 = vcmp.ge.f32.partialorder %v36_v8, 0.0  ;;  %vm38_vm11 = vcmp.lt.f32.partialorder %v36_v8, 16.0 }
   0x7   :  { %v391_v10 = vsel %vm57_vm3, 1.0, %v460_v1  ;;  %vm51_vm8 = vmand %vm49_vm4, %vm50_vm5  ;;  %vm31_vm13 = vcmp.ge.f32.partialorder %v30_v11, 0.0  ;;  %vm32_vm14 = vcmp.lt.f32.partialorder %v30_v11, 16.0  ;;  %vm25_vm1 = vcmp.ge.f32.partialorder %v24_v12, 0.0 }
   0x8   :  { %vm45_vm9 = vmand %vm43_vm6, %vm44_vm7  ;;  %v530_v13 = vrot.slane %v391_v10, %v70_v9  ;;  %v390_v14 = vsel %vm51_vm8, 1.0, %v460_v1  ;;  %vm26_vm2 = vcmp.lt.f32.partialorder %v24_v12, 16.0  ;;  %vm113_vm3 = vcmask 244736  }
   0x9   :  { %v389_v15 = vsel %vm45_vm9, 1.0, %v460_v1  ;;  %vm39_vm0 = vmand %vm37_vm10, %vm38_vm11  ;;  %v536_v20 = vrot.slane %v390_v14, %v70_v9  ;;  %vm89_vm5 = vcmask 7168   ;;  %vm77_vm7 = vcmask 15360  }
   0xa   :  { %74 = vrot.lane.b32.xlu0 %v508_v0, %s466_s0  ;;  %62 = vrot.lane.b32.xlu1 %v508_v0, %s467_s27  ;;  %v538_v21 = vrot.slane %v389_v15, %v70_v9  ;;  %vm33_vm4 = vmand %vm31_vm13, %vm32_vm14  ;;  %v388_v23 = vsel %vm39_vm0, 1.0, %v460_v1  ;;  %vm65_vm8 = vcmask 23552   ;;  %vm135_vm9 = vcmask 457728  }
   0xb   :  { %vm27_vm6 = vmand %vm25_vm1, %vm26_vm2  ;;  %v387_v27 = vsel %vm33_vm4, 1.0, %v460_v1  ;;  %v547_v30 = vrot.slane %v388_v23, %v70_v9  ;;  %vm210_vm10 = vcmask 261120  }
   0xc   :  { %v386_v32 = vsel %vm27_vm6, 1.0, %v460_v1  ;;  %v551_v33 = vrot.slane %v387_v27, %v70_v9 }
   0xd   :  { %v556_v38 = vrot.slane %v386_v32, %v70_v9 }
  0x74   :  { %v123_v16 = vpop.permute.xlu0 %122  ;;  %v99_v17 = vpop.permute.xlu1 %98 }
  0x75   :  { %v126_v18 = vsel %vm125_vm12, %v123_v16, 0.0  ;;  %v102_v22 = vsel %vm101_vm15, %v99_v17, 0.0 }
  0x76   :  { %v133_v19 = vmul.f32 %v530_v13, %v126_v18  ;;  %v109_v29 = vmul.f32 %v538_v21, %v102_v22  ;;  %v274_v22 = vld [vmem:[%s618_s3] sm:$0xff] }
  0x78   :  { %411 = vmatpush3.msra.mxu0 %v133_v19  ;;  %v111_v24 = vpop.permute.xlu0 %110  ;;  %v87_v25 = vpop.permute.xlu1 %86 }
  0x79   :  { %v114_v26 = vsel %vm113_vm3, %v111_v24, 0.0  ;;  %412 = vmatprep.subr.mxu0 %v460_v1  ;;  %v90_v31 = vsel %vm89_vm5, 0.0, %v87_v25 }
  0x7a   :  { %v121_v28 = vmul.f32 %v536_v20, %v114_v26  ;;  %v97_v37 = vmul.f32 %v547_v30, %v90_v31 }
  0x7c   :  { %413 = vmatpush3.msra.mxu0 %v121_v28  ;;  %v75_v34 = vpop.permute.xlu0 %74  ;;  %v63_v35 = vpop.permute.xlu1 %62 }
  0x7d   :  { %414 = vmatprep.subr.mxu0 %v460_v1  ;;  %v78_v36 = vsel %vm77_vm7, 0.0, %v75_v34  ;;  %v66_v39 = vsel %vm65_vm8, 0.0, %v63_v35 }
  0x7e   :  { %415 = vmatpush3.msra.mxu0 %v109_v29  ;;  %v85_v40 = vmul.f32 %v551_v33, %v78_v36  ;;  %v73_v41 = vmul.f32 %v556_v38, %v66_v39 }
  0x7f   :  { %416 = vmatprep.subr.mxu0 %v460_v1 }
  0x80   :  { %417 = vmatpush3.msra.mxu0 %v508_v0 }
  0x81   :  { %418 = vmatprep.subr.mxu0 %v460_v1 }
  0x82   :  { %419 = vmatpush3.msra.mxu0 %v97_v37 }
  0x83   :  { %420 = vmatprep.subr.mxu0 %v460_v1 }
  0x84   :  { %421 = vmatpush3.msra.mxu0 %v85_v40 }
  0x85   :  { %422 = vmatprep.subr.mxu0 %v460_v1 }
  0x86   :  { %423 = vmatpush3.msra.mxu0 %v73_v41 }
  0x87   :  { %425 = vmatmul.mubr.msk.f32.vlgmr.msra.gmra.mxu0 %vm135_vm9, %v134_v42 }
 0x147   :  { %v205_v43 = vpop.f32.mrf.mxu0 }
 0x148   :  { %v211_v44 = vsel %vm210_vm10, %v205_v43, 0.0 }
 0x149   :  { %212 = vadd.xlane.f32.xlu0 %v211_v44  ;;  %v426_v45 = vpop.f32.mrf.mxu0 }
 0x1d2   :  { %v213_v46 = vpop.xlane.xlu0 %212 }
 0x1d3   :  { %v214_v47 = vmul.f32 0.03125, %v213_v46 }
 0x1d5   :  { %v215_v48 = vsub.f32 %v205_v43, %v214_v47 }
 0x1d7   :  { %v216_v49 = vmul.f32 %v215_v48, %v215_v48 }
 0x1d9   :  { %v217_v50 = vsel %vm210_vm10, %v216_v49, 0.0 }
 0x1da   :  { %218 = vadd.xlane.f32.xlu1 %v217_v50 }
 0x263   :  { %v219_v52 = vpop.xlane.xlu1 %218 }
 0x264   :  { %v220_v53 = vmul.f32 0.03125, %v219_v52 }
 0x266   :  { %v221_v54 = vadd.f32 1e-05, %v220_v53 }
 0x268   :  { %456 = vrsqrt.f32 %v221_v54 }
 0x275   :  { %v457_v57 = vpop.eup %456 }
 0x276   :  { %v223_v58 = vmul.f32 %v457_v57, %v209_v56 }
 0x278   :  { %232 = vperm.xlu1 %454, %v223_v58   ;;  %v224_v59 = vmul.f32 %v223_v58, %v214_v47 }
 0x27a   :  { %226 = vrot.lane.b32.xlu0 %v224_v59, %s464_s26 }
 0x2ec   :  { %v227_v60 = vpop.permute.xlu0 %226 }
 0x2ed   :  { %v229_v61 = vsub.f32 %v209_v56, %v227_v60 }
 0x2ef   :  { %238 = vperm.xlu0 %455, %v229_v61  }
 0x2f3   :  { %v233_v62 = vpop.permute.xlu1 %232 }
 0x2f4   :  { %v235_v63 = vmul.f32 %v233_v62, %v205_v43 }
 0x36a   :  { %v239_v0 = vpop.permute.xlu0 %238 }
 0x36b   :  { %v241_v2 = vadd.f32 %v239_v0, %v235_v63 }
 0x36d   :  { %v242_v3 = vmax.f32 %v241_v2, 0.0 }
 0x36f   :  { %259 = vrot.lane.b32.xlu0 %v242_v3, %s462_s24  ;;  %269 = vrot.lane.b32.xlu1 %v242_v3, %s461_s23 }
 0x373   :  { %249 = vrot.lane.b32.xlu0 %v242_v3, %s466_s0  ;;  %264 = vrot.lane.b32.xlu1 %v242_v3, %s463_s25 }
 0x377   :  { %254 = vrot.lane.b32.xlu1 %v242_v3, %s464_s26 }
 0x37b   :  { %244 = vrot.lane.b32.xlu1 %v242_v3, %s467_s27 }
 0x3e1   :  { %v270_v4 = vpop.permute.xlu1 %269  ;;  %v260_v6 = vpop.permute.xlu0 %259 }
 0x3e2   :  { %v272_v5 = vsel %vm125_vm12, %v270_v4, 0.0  ;;  %v262_v9 = vsel %vm101_vm15, %v260_v6, 0.0 }
 0x3e3   :  { %v273_v7 = vmul.f32 %v272_v5, %v530_v13  ;;  %v263_v12 = vmul.f32 %v262_v9, %v538_v21 }
 0x3e5   :  { %428 = vmatpush3.msra.mxu1 %v273_v7  ;;  %v265_v8 = vpop.permute.xlu1 %264  ;;  %v250_v14 = vpop.permute.xlu0 %249 }
 0x3e6   :  { %v267_v10 = vsel %vm113_vm3, %v265_v8, 0.0  ;;  %429 = vmatprep.subr.mxu1 %v460_v1  ;;  %v252_v13 = vsel %vm77_vm7, 0.0, %v250_v14 }
 0x3e7   :  { %v268_v11 = vmul.f32 %v267_v10, %v536_v20  ;;  %v253_v20 = vmul.f32 %v252_v13, %v551_v33 }
 0x3e9   :  { %430 = vmatpush3.msra.mxu1 %v268_v11  ;;  %v255_v15 = vpop.permute.xlu1 %254 }
 0x3ea   :  { %v257_v16 = vsel %vm89_vm5, 0.0, %v255_v15  ;;  %431 = vmatprep.subr.mxu1 %v460_v1 }
 0x3eb   :  { %432 = vmatpush3.msra.mxu1 %v263_v12  ;;  %v258_v17 = vmul.f32 %v257_v16, %v547_v30 }
 0x3ec   :  { %433 = vmatprep.subr.mxu1 %v460_v1 }
 0x3ed   :  { %434 = vmatpush3.msra.mxu1 %v242_v3  ;;  %v245_v18 = vpop.permute.xlu1 %244 }
 0x3ee   :  { %v247_v19 = vsel %vm65_vm8, 0.0, %v245_v18  ;;  %435 = vmatprep.subr.mxu1 %v460_v1 }
 0x3ef   :  { %436 = vmatpush3.msra.mxu1 %v258_v17  ;;  %v248_v21 = vmul.f32 %v247_v19, %v556_v38 }
 0x3f0   :  { %437 = vmatprep.subr.mxu1 %v460_v1 }
 0x3f1   :  { %438 = vmatpush3.msra.mxu1 %v253_v20 }
 0x3f2   :  { %439 = vmatprep.subr.mxu1 %v460_v1  ;;  %v348_v1 = vld [vmem:[%s619_s5] sm:$0xff] }
 0x3f3   :  { %440 = vmatpush3.msra.mxu1 %v248_v21 }
 0x3f4   :  { %442 = vmatmul.mubr.msk.f32.vlgmr.msra.gmra.mxu1 %vm135_vm9, %v274_v22 }
 0x4b4   :  { %v344_v23 = vpop.f32.mrf.mxu1 }
 0x4b5   :  { %v349_v24 = vsel %vm210_vm10, %v344_v23, 0.0 }
 0x4b6   :  { %350 = vadd.xlane.f32.xlu0 %v349_v24  ;;  %v443_v25 = vpop.f32.mrf.mxu1 }
 0x53f   :  { %v351_v26 = vpop.xlane.xlu0 %350 }
 0x540   :  { %v352_v27 = vmul.f32 0.03125, %v351_v26 }
 0x542   :  { %v353_v28 = vsub.f32 %v344_v23, %v352_v27 }
 0x544   :  { %v354_v29 = vmul.f32 %v353_v28, %v353_v28 }
 0x546   :  { %v355_v30 = vsel %vm210_vm10, %v354_v29, 0.0 }
 0x547   :  { %356 = vadd.xlane.f32.xlu1 %v355_v30 }
 0x5d0   :  { %v357_v31 = vpop.xlane.xlu1 %356 }
 0x5d1   :  { %v358_v32 = vmul.f32 0.03125, %v357_v31 }
 0x5d3   :  { %v359_v33 = vadd.f32 1e-05, %v358_v32 }
 0x5d5   :  { %458 = vrsqrt.f32 %v359_v33 }
 0x5e2   :  { %v459_v34 = vpop.eup %458 }
 0x5e3   :  { %v361_v35 = vmul.f32 %v459_v34, %v348_v1 }
 0x5e5   :  { %370 = vperm.xlu1 %454, %v361_v35   ;;  %v362_v36 = vmul.f32 %v361_v35, %v352_v27 }
 0x5e7   :  { %364 = vrot.lane.b32.xlu0 %v362_v36, %s464_s26 }
 0x659   :  { %v365_v37 = vpop.permute.xlu0 %364 }
 0x65a   :  { %v367_v38 = vsub.f32 %v348_v1, %v365_v37 }
 0x65c   :  { %376 = vperm.xlu0 %455, %v367_v38  }
 0x660   :  { %v371_v39 = vpop.permute.xlu1 %370 }
 0x661   :  { %v373_v40 = vmul.f32 %v371_v39, %v344_v23 }
 0x6d7   :  { %v377_v41 = vpop.permute.xlu0 %376 }
 0x6d8   :  { %v379_v42 = vadd.f32 %v377_v41, %v373_v40 }
 0x6da   :  { %v380_v43 = vmax.f32 %v379_v42, 0.0 }
 0x6dc   :  { %381 = vst.msk [vmem:[%s620_s6] sm:$0xff] %vm210_vm10, %v380_v43 }

</bundles_post_ra>
